<compile_context>
chip_gen: v7x
topology: tpu7x:2x2x1
jax: 0.10.0
libtpu: 0.0.40
codegen_flags: <defaults>
</compile_context>

<pallas_src>
import functools

import jax
import jax.numpy as jnp
from jax.experimental import pallas as pl
from jax.experimental.pallas import tpu as pltpu

EPS = 1e-5
LANES = 128
VMEM_LIMIT = 32 * 1024 * 1024          # explicit scoped-VMEM limit (all gens)
VMEM_BUDGET = 24 * 1024 * 1024         # working-set budget w/ headroom


# ------------------------------ small helpers ------------------------------ #

def _round_up(x, m):
    return (x + m - 1) // m * m


def _pad2d(a, rows, cols):
    r, c = a.shape
    if r == rows and c == cols:
        return a
    return jnp.pad(a, ((0, rows - r), (0, cols - c)))


def _choose_tile_m(m, k_max, cp):
    """Largest M tile (<=512 rows) whose double-buffered working set fits VMEM."""
    tile = 512
    while tile > 8 and tile > m:
        tile //= 2
    while tile > 8:
        need = (2 * tile * k_max * 2        # patch tiles, bf16, 2 buffers
                + 2 * k_max * cp * 2        # weight tile, bf16, 2 buffers
                + 2 * tile * cp * 2         # y tiles, bf16, 2 buffers
                + 2 * tile * cp * 4         # apply-phase f32 tiles
                + 4 * 8 * cp * 4)           # stats / gamma-beta slabs
        if need <= VMEM_BUDGET:
            break
        tile //= 2
    return max(tile, 8)


# ------------------------------ Pallas kernels ------------------------------ #

def _matmul_stats_kernel(p_ref, w_ref, y_ref, st_ref):
    """y = patches @ W on the MXU (f32 acc); accumulate per-channel sum/sumsq."""
    y = jnp.dot(p_ref[...], w_ref[...], preferred_element_type=jnp.float32)
    y_ref[...] = y.astype(y_ref.dtype)

    @pl.when(pl.program_id(0) == 0)
    def _():
        st_ref[...] = jnp.zeros_like(st_ref)

    s = jnp.sum(y, axis=0, keepdims=True)           # (1, Cp)
    sq = jnp.sum(y * y, axis=0, keepdims=True)      # (1, Cp), single pass
    pad = jnp.zeros((st_ref.shape[0] - 2, s.shape[1]), jnp.float32)
    st_ref[...] = st_ref[...] + jnp.concatenate([s, sq, pad], axis=0)


def _bn_apply_kernel(*refs, relu, inv_m, sc_mode):
    """BN(y) [+ shortcut (raw identity or BN(shortcut conv))] [+ ReLU]."""
    if sc_mode == "bn":
        y_ref, st_ref, gb_ref, ys_ref, sts_ref, gbs_ref, o_ref = refs
    elif sc_mode == "identity":
        y_ref, st_ref, gb_ref, s_ref, o_ref = refs
    else:
        y_ref, st_ref, gb_ref, o_ref = refs

    def bn(y, st, gb):
        mean = st[0:1, :] * inv_m
        var = st[1:2, :] * inv_m - mean * mean      # biased variance (train mode)
        scale = gb[0:1, :] * jax.lax.rsqrt(var + EPS)
        shift = gb[1:2, :] - mean * scale
        return y.astype(jnp.float32) * scale + shift

    out = bn(y_ref[...], st_ref[...], gb_ref[...])
    if sc_mode == "bn":
        out = out + bn(ys_ref[...], sts_ref[...], gbs_ref[...])
    elif sc_mode == "identity":
        out = out + s_ref[...].astype(jnp.float32)
    if relu:
        out = jnp.maximum(out, 0.0)
    o_ref[...] = out.astype(o_ref.dtype)


# ------------------------------ kernel wrappers ----------------------------- #

def matmul_stats(patches, w_mat, *, tile_m):
    """Phase 1: tiled conv-as-matmul + per-channel sum/sumsq accumulation."""
    mp, kp = patches.shape
    cp = w_mat.shape[1]
    grid = (mp // tile_m,)
    flops = 2 * mp * kp * cp
    bytes_accessed = 2 * (mp * kp + kp * cp + mp * cp) + 4 * 8 * cp
    return pl.pallas_call(
        _matmul_stats_kernel,
        out_shape=(jax.ShapeDtypeStruct((mp, cp), jnp.bfloat16),
                   jax.ShapeDtypeStruct((8, cp), jnp.float32)),
        grid=grid,
        in_specs=[pl.BlockSpec((tile_m, kp), lambda i: (i, 0)),
                  pl.BlockSpec((kp, cp), lambda i: (0, 0))],     # weights resident
        out_specs=(pl.BlockSpec((tile_m, cp), lambda i: (i, 0)),
                   pl.BlockSpec((8, cp), lambda i: (0, 0))),     # resident accumulator
        compiler_params=pltpu.CompilerParams(
            dimension_semantics=("arbitrary",),   # stats reduction over M
            vmem_limit_bytes=VMEM_LIMIT),
        cost_estimate=pl.CostEstimate(flops=int(flops), transcendentals=0,
                                      bytes_accessed=int(bytes_accessed)),
    )(patches, w_mat)


def bn_apply(y, stats, gb, *, relu, m_true, out_dtype, tile_m,
             sc_mode="none", sc=None, sc_stats=None, sc_gb=None):
    """Phase 2: normalize + affine (+ fused shortcut add) (+ ReLU), tiled over M."""
    mp, cp = y.shape
    grid = (mp // tile_m,)
    tile_spec = pl.BlockSpec((tile_m, cp), lambda i: (i, 0))
    slab_spec = pl.BlockSpec((8, cp), lambda i: (0, 0))

    args = [y, stats, gb]
    in_specs = [tile_spec, slab_spec, slab_spec]
    if sc_mode == "bn":
        args += [sc, sc_stats, sc_gb]
        in_specs += [tile_spec, slab_spec, slab_spec]
    elif sc_mode == "identity":
        args += [sc]
        in_specs += [tile_spec]

    kern = functools.partial(_bn_apply_kernel, relu=relu,
                             inv_m=1.0 / float(m_true), sc_mode=sc_mode)
    out_bytes = mp * cp * jnp.dtype(out_dtype).itemsize
    in_bytes = sum(int(a.size) * a.dtype.itemsize for a in args)
    return pl.pallas_call(
        kern,
        out_shape=jax.ShapeDtypeStruct((mp, cp), out_dtype),
        grid=grid,
        in_specs=in_specs,
        out_specs=tile_spec,
        compiler_params=pltpu.CompilerParams(
            dimension_semantics=("parallel",),    # independent tiles (megacore)
            vmem_limit_bytes=VMEM_LIMIT),
        cost_estimate=pl.CostEstimate(flops=int(8 * mp * cp),
                                      transcendentals=int(2 * cp),
                                      bytes_accessed=int(in_bytes + out_bytes)),
    )(*args)


# ------------------------------ host-side glue ------------------------------ #

def im2col_3x3(x_nhwc, stride):
    """3x3, padding=1 patch extraction -> (B*Ho*Wo, 9*C), plus Ho, Wo."""
    B, H, W, C = x_nhwc.shape
    xp = jnp.pad(x_nhwc, ((0, 0), (1, 1), (1, 1), (0, 0)))
    Ho = (H + 2 - 3) // stride + 1
    Wo = (W + 2 - 3) // stride + 1
    cols = []
    for dy in range(3):
        for dx in range(3):
            cols.append(xp[:, dy:dy + stride * (Ho - 1) + 1:stride,
                           dx:dx + stride * (Wo - 1) + 1:stride, :])
    patches = jnp.concatenate(cols, axis=-1)        # (B, Ho, Wo, 9*C), (dy,dx,C)
    return patches.reshape(B * Ho * Wo, 9 * C), Ho, Wo


def _w_oihw_to_mat(w_oihw):
    cout, cin, kh, kw = w_oihw.shape
    return jnp.transpose(w_oihw, (2, 3, 1, 0)).reshape(kh * kw * cin, cout)


def _pack_gb(gamma, beta, cp):
    gb = jnp.zeros((8, cp), jnp.float32)
    gb = gb.at[0, :gamma.shape[0]].set(gamma.astype(jnp.float32))
    gb = gb.at[1, :beta.shape[0]].set(beta.astype(jnp.float32))
    return gb


def pack_params(params):
    """One-time packing: padded bf16 weight matrices + (8, Cp) f32 BN slabs."""
    planes, cin = params["w1"].shape[0], params["w1"].shape[1]
    cp = _round_up(planes, LANES)
    packed = {
        "w1": _pad2d(_w_oihw_to_mat(params["w1"]),
                     _round_up(9 * cin, LANES), cp).astype(jnp.bfloat16),
        "gb1": _pack_gb(params["g1"], params["b1"], cp),
        "w2": _pad2d(_w_oihw_to_mat(params["w2"]),
                     _round_up(9 * planes, LANES), cp).astype(jnp.bfloat16),
        "gb2": _pack_gb(params["g2"], params["b2"], cp),
    }
    if "ws" in params:
        packed["ws"] = _pad2d(_w_oihw_to_mat(params["ws"]),
                              _round_up(cin, LANES), cp).astype(jnp.bfloat16)
        packed["gbs"] = _pack_gb(params["gs"], params["bs"], cp)
    return packed


def basic_block_forward(x_nchw, packed, *, stride, planes):
    x = jnp.transpose(x_nchw, (0, 2, 3, 1)).astype(jnp.float32)   # NCHW -> NHWC
    B, H, W, Cin = x.shape
    Cp = packed["w1"].shape[1]
    Kp1 = packed["w1"].shape[0]
    Kp2 = packed["w2"].shape[0]
    use_proj = (stride != 1) or (Cin != planes)
    Kps = packed["ws"].shape[0] if use_proj else 0

    Ho = (H + 2 - 3) // stride + 1
    Wo = (W + 2 - 3) // stride + 1
    M = B * Ho * Wo
    tile_m = _choose_tile_m(M, max(Kp1, Kp2, Kps), Cp)
    Mp = _round_up(M, tile_m)

    # ---- conv1 (3x3, stride=s) + bn1 + relu ----
    p1, _, _ = im2col_3x3(x, stride)
    p1 = _pad2d(p1, Mp, Kp1).astype(jnp.bfloat16)
    y1, st1 = matmul_stats(p1, packed["w1"], tile_m=tile_m)
    out1 = bn_apply(y1, st1, packed["gb1"], relu=True, m_true=M,
                    out_dtype=jnp.bfloat16, tile_m=tile_m)
    out1_nhwc = out1[:M, :planes].reshape(B, Ho, Wo, planes)       # bf16

    # ---- shortcut ----
    if use_proj:
        xs = x[:, ::stride, ::stride, :].reshape(M, Cin)
        xs = _pad2d(xs, Mp, Kps).astype(jnp.bfloat16)
        ys, sts = matmul_stats(xs, packed["ws"], tile_m=tile_m)    # 1x1 conv
        sc_kwargs = dict(sc_mode="bn", sc=ys, sc_stats=sts, sc_gb=packed["gbs"])
    else:
        sc = _pad2d(x.reshape(M, Cin), Mp, Cp)                     # identity, f32
        sc_kwargs = dict(sc_mode="identity", sc=sc)

    # ---- conv2 (3x3, stride=1) + bn2 + shortcut add + relu (fused apply) ----
    p2, _, _ = im2col_3x3(out1_nhwc, 1)
    p2 = _pad2d(p2, Mp, Kp2).astype(jnp.bfloat16)
    y2, st2 = matmul_stats(p2, packed["w2"], tile_m=tile_m)
    out = bn_apply(y2, st2, packed["gb2"], relu=True, m_true=M,
                   out_dtype=jnp.float32, tile_m=tile_m, **sc_kwargs)

    out = out[:M, :planes].reshape(B, Ho, Wo, planes)
    return jnp.transpose(out, (0, 3, 1, 2))                        # NHWC -> NCHW


# --------------------------- pure-JAX reference ----------------------------- #

def _bn_train_ref(y_nhwc, gamma, beta):
    mean = y_nhwc.mean(axis=(0, 1, 2))
    var = ((y_nhwc - mean) ** 2).mean(axis=(0, 1, 2))
    return (y_nhwc - mean) * jax.lax.rsqrt(var + EPS) * gamma + beta


def ref_forward(x_nchw, params, stride):
    x = jnp.transpose(x_nchw, (0, 2, 3, 1))

    def conv(inp, w_oihw, s):
        w = jnp.transpose(w_oihw, (2, 3, 1, 0))  # HWIO
        pad = ((1, 1), (1, 1)) if w.shape[0] == 3 else ((0, 0), (0, 0))
        return jax.lax.conv_general_dilated(
            inp, w, window_strides=(s, s), padding=pad,
            dimension_numbers=("NHWC", "HWIO", "NHWC"))

    out = jax.nn.relu(_bn_train_ref(conv(x, params["w1"], stride),
                                    params["g1"], params["b1"]))
    out = _bn_train_ref(conv(out, params["w2"], 1), params["g2"], params["b2"])
    cin, planes = x.shape[-1], params["w1"].shape[0]
    if stride != 1 or cin != planes:
        sc = _bn_train_ref(conv(x, params["ws"], stride), params["gs"], params["bs"])
    else:
        sc = x
    return jnp.transpose(jax.nn.relu(out + sc), (0, 3, 1, 2))


# --------------------------------- main ------------------------------------ #

if __name__ == "__main__":
    import numpy as np

    def make_params(key, in_planes, planes, with_proj):
        ks = jax.random.split(key, 7)
        p = dict(
            w1=jax.random.normal(ks[0], (planes, in_planes, 3, 3), jnp.float32) * 0.1,
            g1=1.0 + 0.1 * jax.random.normal(ks[1], (planes,), jnp.float32),
            b1=0.1 * jax.random.normal(ks[2], (planes,), jnp.float32),
            w2=jax.random.normal(ks[3], (planes, planes, 3, 3), jnp.float32) * 0.1,
            g2=1.0 + 0.1 * jax.random.normal(ks[4], (planes,), jnp.float32),
            b2=0.1 * jax.random.normal(ks[5], (planes,), jnp.float32),
        )
        if with_proj:
            p.update(
                ws=jax.random.normal(ks[6], (planes, in_planes, 1, 1), jnp.float32) * 0.1,
                gs=1.0 + 0.05 * jnp.arange(planes, dtype=jnp.float32) / planes,
                bs=0.05 * jnp.arange(planes, dtype=jnp.float32) / planes,
            )
        return p

    fwd = jax.jit(basic_block_forward, static_argnames=("stride", "planes"))

    key = jax.random.PRNGKey(0)
    k_x1, k_p1, k_x2, k_p2 = jax.random.split(key, 4)

    # Tolerance note: matmul operands are bf16 (f32 accumulation / f32 BN math),
    # so comparison vs. the full-f32 reference uses a bf16-level tolerance.
    RTOL = ATOL = 5e-2

    # Case 1: strided block with 1x1-conv + BN projection shortcut.
    B, Cin, H, W, planes, stride = 2, 4, 16, 16, 8, 2
    x1 = jax.random.normal(k_x1, (B, Cin, H, W), jnp.float32)
    params1 = make_params(k_p1, Cin, planes, with_proj=True)
    out1 = jax.block_until_ready(
        fwd(x1, pack_params(params1), stride=stride, planes=planes))
    assert out1.shape == (B, planes, H // stride, W // stride)
    ref1 = ref_forward(x1, params1, stride)
    np.testing.assert_allclose(np.asarray(out1), np.asarray(ref1),
                               rtol=RTOL, atol=ATOL)

    # Case 2: stride-1 block with identity shortcut.
    B2, C2, H2, W2 = 2, 8, 16, 16
    x2 = jax.random.normal(k_x2, (B2, C2, H2, W2), jnp.float32)
    params2 = make_params(k_p2, C2, C2, with_proj=False)
    out2 = jax.block_until_ready(
        fwd(x2, pack_params(params2), stride=1, planes=C2))
    assert out2.shape == (B2, C2, H2, W2)
    ref2 = ref_forward(x2, params2, 1)
    np.testing.assert_allclose(np.asarray(out2), np.asarray(ref2),
                               rtol=RTOL, atol=ATOL)

    print("KERNEL_OK")
</pallas_src>

<mosaic_0001>
module attributes {stable_mosaic.version = 11 : i64} {
  func.func @_matmul_stats_kernel(%arg0: i32, %arg1: memref<128x128xbf16, #tpu.memory_space<vmem>>, %arg2: memref<128x128xbf16, #tpu.memory_space<vmem>>, %arg3: memref<128x128xbf16, #tpu.memory_space<vmem>>, %arg4: memref<8x128xf32, #tpu.memory_space<vmem>>) attributes {dimension_semantics = [#tpu.dimension_semantics<arbitrary>], iteration_bounds = array<i64: 1>, scalar_prefetch = 0 : i64, scratch_operands = 0 : i64, tpu.core_type = #tpu.core_type<tc>, window_params = [{transform_indices = @transform_0, window_bounds = array<i64: 128, 128>}, {pipeline_mode = #tpu.pipeline_mode<synchronous>, transform_indices = @transform_1, window_bounds = array<i64: 128, 128>}, {transform_indices = @transform_2, window_bounds = array<i64: 128, 128>}, {pipeline_mode = #tpu.pipeline_mode<synchronous>, transform_indices = @transform_3, window_bounds = array<i64: 8, 128>}]} {
    %c0 = arith.constant 0 : index
    %c0_0 = arith.constant 0 : index
    %0 = vector.load %arg1[%c0, %c0_0] : memref<128x128xbf16, #tpu.memory_space<vmem>>, vector<128x128xbf16>
    %c0_1 = arith.constant 0 : index
    %c0_2 = arith.constant 0 : index
    %1 = vector.load %arg2[%c0_1, %c0_2] : memref<128x128xbf16, #tpu.memory_space<vmem>>, vector<128x128xbf16>
    %cst = arith.constant dense<0.000000e+00> : vector<128x128xf32>
    %2 = tpu.matmul %0, %1, %cst {dimension_numbers = #tpu.dot_dimension_numbers<[1], [0], [0], [1], [0, 0, 1, 1], [], []>} : vector<128x128xbf16>, vector<128x128xbf16>, vector<128x128xf32> -> vector<128x128xf32>
    %3 = arith.truncf %2 : vector<128x128xf32> to vector<128x128xbf16>
    %c0_3 = arith.constant 0 : index
    %c0_4 = arith.constant 0 : index
    %4 = vector.load %arg3[%c0_3, %c0_4] : memref<128x128xbf16, #tpu.memory_space<vmem>>, vector<128x128xbf16>
    tpu.vector_store %arg3[%c0_3, %c0_4], %3 {strides = array<i32>} : memref<128x128xbf16, #tpu.memory_space<vmem>>, vector<128x128xbf16>,
    %c0_i32 = arith.constant 0 : i32
    %5 = arith.cmpi eq, %arg0, %c0_i32 : i32
    %6 = arith.extui %5 : i1 to i32
    %c0_i32_5 = arith.constant 0 : i32
    %7 = arith.cmpi ne, %6, %c0_i32_5 : i32
    scf.if %7 {
      %cst_13 = arith.constant 0.000000e+00 : f32
      %18 = vector.broadcast %cst_13 : f32 to vector<8x128xf32>
      %c0_14 = arith.constant 0 : index
      %c0_15 = arith.constant 0 : index
      %19 = vector.load %arg4[%c0_14, %c0_15] : memref<8x128xf32, #tpu.memory_space<vmem>>, vector<8x128xf32>
      tpu.vector_store %arg4[%c0_14, %c0_15], %18 {strides = array<i32>} : memref<8x128xf32, #tpu.memory_space<vmem>>, vector<8x128xf32>,
    } else {
    }
    %cst_6 = arith.constant dense<0.000000e+00> : vector<128xf32>
    %8 = vector.multi_reduction <add>, %2, %cst_6 [0] : vector<128x128xf32> to vector<128xf32>
    %9 = vector.shape_cast %8 : vector<128xf32> to vector<1x128xf32>
    %10 = arith.mulf %2, %2 : vector<128x128xf32>
    %cst_7 = arith.constant dense<0.000000e+00> : vector<128xf32>
    %11 = vector.multi_reduction <add>, %10, %cst_7 [0] : vector<128x128xf32> to vector<128xf32>
    %12 = vector.shape_cast %11 : vector<128xf32> to vector<1x128xf32>
    %cst_8 = arith.constant 0.000000e+00 : f32
    %13 = vector.broadcast %cst_8 : f32 to vector<6x128xf32>
    %c0_9 = arith.constant 0 : index
    %c0_10 = arith.constant 0 : index
    %14 = vector.load %arg4[%c0_9, %c0_10] : memref<8x128xf32, #tpu.memory_space<vmem>>, vector<8x128xf32>
    %15 = tpu.concatenate %9, %12, %13 in 0 : vector<1x128xf32>, vector<1x128xf32>, vector<6x128xf32> -> vector<8x128xf32>
    %16 = arith.addf %14, %15 : vector<8x128xf32>
    %c0_11 = arith.constant 0 : index
    %c0_12 = arith.constant 0 : index
    %17 = vector.load %arg4[%c0_11, %c0_12] : memref<8x128xf32, #tpu.memory_space<vmem>>, vector<8x128xf32>
    tpu.vector_store %arg4[%c0_11, %c0_12], %16 {strides = array<i32>} : memref<8x128xf32, #tpu.memory_space<vmem>>, vector<8x128xf32>,
    return
  }
  func.func @transform_0(%arg0: i32) -> (i32, i32) {
    %c0_i32 = arith.constant 0 : i32
    %c0_i32_0 = arith.constant 0 : i32
    return %arg0, %c0_i32 : i32, i32
  }
  func.func @transform_1(%arg0: i32) -> (i32, i32) {
    %c0_i32 = arith.constant 0 : i32
    %c0_i32_0 = arith.constant 0 : i32
    %c0_i32_1 = arith.constant 0 : i32
    return %c0_i32, %c0_i32_0 : i32, i32
  }
  func.func @transform_2(%arg0: i32) -> (i32, i32) {
    %c0_i32 = arith.constant 0 : i32
    %c0_i32_0 = arith.constant 0 : i32
    return %arg0, %c0_i32 : i32, i32
  }
  func.func @transform_3(%arg0: i32) -> (i32, i32) {
    %c0_i32 = arith.constant 0 : i32
    %c0_i32_0 = arith.constant 0 : i32
    %c0_i32_1 = arith.constant 0 : i32
    return %c0_i32, %c0_i32_0 : i32, i32
  }
}

module attributes {stable_mosaic.version = 11 : i64} {
  func.func @_bn_apply_kernel(%arg0: i32, %arg1: memref<128x128xbf16, #tpu.memory_space<vmem>>, %arg2: memref<8x128xf32, #tpu.memory_space<vmem>>, %arg3: memref<8x128xf32, #tpu.memory_space<vmem>>, %arg4: memref<128x128xbf16, #tpu.memory_space<vmem>>) attributes {dimension_semantics = [#tpu.dimension_semantics<parallel>], iteration_bounds = array<i64: 1>, scalar_prefetch = 0 : i64, scratch_operands = 0 : i64, tpu.core_type = #tpu.core_type<tc>, window_params = [{transform_indices = @transform_0, window_bounds = array<i64: 128, 128>}, {pipeline_mode = #tpu.pipeline_mode<synchronous>, transform_indices = @transform_1, window_bounds = array<i64: 8, 128>}, {pipeline_mode = #tpu.pipeline_mode<synchronous>, transform_indices = @transform_2, window_bounds = array<i64: 8, 128>}, {transform_indices = @transform_3, window_bounds = array<i64: 128, 128>}]} {
    %c0 = arith.constant 0 : index
    %c0_0 = arith.constant 0 : index
    %0 = vector.load %arg1[%c0, %c0_0] : memref<128x128xbf16, #tpu.memory_space<vmem>>, vector<128x128xbf16>
    %c0_1 = arith.constant 0 : index
    %c0_2 = arith.constant 0 : index
    %1 = vector.load %arg2[%c0_1, %c0_2] : memref<8x128xf32, #tpu.memory_space<vmem>>, vector<8x128xf32>
    %c0_3 = arith.constant 0 : index
    %c0_4 = arith.constant 0 : index
    %2 = vector.load %arg3[%c0_3, %c0_4] : memref<8x128xf32, #tpu.memory_space<vmem>>, vector<8x128xf32>
    %3 = vector.extract_strided_slice %1 {offsets = [0, 0], sizes = [1, 128], strides = [1, 1]} : vector<8x128xf32> to vector<1x128xf32>
    %cst = arith.constant 7.812500e-03 : f32
    %4 = vector.broadcast %cst : f32 to vector<1x128xf32>
    %5 = arith.mulf %3, %4 : vector<1x128xf32>
    %6 = vector.extract_strided_slice %1 {offsets = [1, 0], sizes = [1, 128], strides = [1, 1]} : vector<8x128xf32> to vector<1x128xf32>
    %cst_5 = arith.constant 7.812500e-03 : f32
    %7 = vector.broadcast %cst_5 : f32 to vector<1x128xf32>
    %8 = arith.mulf %6, %7 : vector<1x128xf32>
    %9 = arith.mulf %5, %5 : vector<1x128xf32>
    %10 = arith.subf %8, %9 : vector<1x128xf32>
    %11 = vector.extract_strided_slice %2 {offsets = [0, 0], sizes = [1, 128], strides = [1, 1]} : vector<8x128xf32> to vector<1x128xf32>
    %cst_6 = arith.constant 9.99999974E-6 : f32
    %12 = vector.broadcast %cst_6 : f32 to vector<1x128xf32>
    %13 = arith.addf %10, %12 : vector<1x128xf32>
    %14 = math.rsqrt %13 : vector<1x128xf32>
    %15 = arith.mulf %11, %14 : vector<1x128xf32>
    %16 = vector.extract_strided_slice %2 {offsets = [1, 0], sizes = [1, 128], strides = [1, 1]} : vector<8x128xf32> to vector<1x128xf32>
    %17 = arith.mulf %5, %15 : vector<1x128xf32>
    %18 = arith.subf %16, %17 : vector<1x128xf32>
    %19 = arith.extf %0 : vector<128x128xbf16> to vector<128x128xf32>
    %20 = vector.broadcast %15 : vector<1x128xf32> to vector<128x128xf32>
    %21 = arith.mulf %19, %20 : vector<128x128xf32>
    %22 = vector.broadcast %18 : vector<1x128xf32> to vector<128x128xf32>
    %23 = arith.addf %21, %22 : vector<128x128xf32>
    %cst_7 = arith.constant 0.000000e+00 : f32
    %24 = vector.broadcast %cst_7 : f32 to vector<128x128xf32>
    %25 = arith.maximumf %23, %24 : vector<128x128xf32>
    %26 = arith.truncf %25 : vector<128x128xf32> to vector<128x128xbf16>
    %c0_8 = arith.constant 0 : index
    %c0_9 = arith.constant 0 : index
    %27 = vector.load %arg4[%c0_8, %c0_9] : memref<128x128xbf16, #tpu.memory_space<vmem>>, vector<128x128xbf16>
    tpu.vector_store %arg4[%c0_8, %c0_9], %26 {strides = array<i32>} : memref<128x128xbf16, #tpu.memory_space<vmem>>, vector<128x128xbf16>,
    return
  }
  func.func @transform_0(%arg0: i32) -> (i32, i32) {
    %c0_i32 = arith.constant 0 : i32
    %c0_i32_0 = arith.constant 0 : i32
    return %arg0, %c0_i32 : i32, i32
  }
  func.func @transform_1(%arg0: i32) -> (i32, i32) {
    %c0_i32 = arith.constant 0 : i32
    %c0_i32_0 = arith.constant 0 : i32
    %c0_i32_1 = arith.constant 0 : i32
    return %c0_i32, %c0_i32_0 : i32, i32
  }
  func.func @transform_2(%arg0: i32) -> (i32, i32) {
    %c0_i32 = arith.constant 0 : i32
    %c0_i32_0 = arith.constant 0 : i32
    %c0_i32_1 = arith.constant 0 : i32
    return %c0_i32, %c0_i32_0 : i32, i32
  }
  func.func @transform_3(%arg0: i32) -> (i32, i32) {
    %c0_i32 = arith.constant 0 : i32
    %c0_i32_0 = arith.constant 0 : i32
    return %arg0, %c0_i32 : i32, i32
  }
}

module attributes {stable_mosaic.version = 11 : i64} {
  func.func @_bn_apply_kernel(%arg0: i32, %arg1: memref<128x128xbf16, #tpu.memory_space<vmem>>, %arg2: memref<8x128xf32, #tpu.memory_space<vmem>>, %arg3: memref<8x128xf32, #tpu.memory_space<vmem>>, %arg4: memref<128x128xbf16, #tpu.memory_space<vmem>>, %arg5: memref<8x128xf32, #tpu.memory_space<vmem>>, %arg6: memref<8x128xf32, #tpu.memory_space<vmem>>, %arg7: memref<128x128xf32, #tpu.memory_space<vmem>>) attributes {dimension_semantics = [#tpu.dimension_semantics<parallel>], iteration_bounds = array<i64: 1>, scalar_prefetch = 0 : i64, scratch_operands = 0 : i64, tpu.core_type = #tpu.core_type<tc>, window_params = [{transform_indices = @transform_0, window_bounds = array<i64: 128, 128>}, {pipeline_mode = #tpu.pipeline_mode<synchronous>, transform_indices = @transform_1, window_bounds = array<i64: 8, 128>}, {pipeline_mode = #tpu.pipeline_mode<synchronous>, transform_indices = @transform_2, window_bounds = array<i64: 8, 128>}, {transform_indices = @transform_3, window_bounds = array<i64: 128, 128>}, {pipeline_mode = #tpu.pipeline_mode<synchronous>, transform_indices = @transform_4, window_bounds = array<i64: 8, 128>}, {pipeline_mode = #tpu.pipeline_mode<synchronous>, transform_indices = @transform_5, window_bounds = array<i64: 8, 128>}, {transform_indices = @transform_6, window_bounds = array<i64: 128, 128>}]} {
    %c0 = arith.constant 0 : index
    %c0_0 = arith.constant 0 : index
    %0 = vector.load %arg1[%c0, %c0_0] : memref<128x128xbf16, #tpu.memory_space<vmem>>, vector<128x128xbf16>
    %c0_1 = arith.constant 0 : index
    %c0_2 = arith.constant 0 : index
    %1 = vector.load %arg2[%c0_1, %c0_2] : memref<8x128xf32, #tpu.memory_space<vmem>>, vector<8x128xf32>
    %c0_3 = arith.constant 0 : index
    %c0_4 = arith.constant 0 : index
    %2 = vector.load %arg3[%c0_3, %c0_4] : memref<8x128xf32, #tpu.memory_space<vmem>>, vector<8x128xf32>
    %3 = vector.extract_strided_slice %1 {offsets = [0, 0], sizes = [1, 128], strides = [1, 1]} : vector<8x128xf32> to vector<1x128xf32>
    %cst = arith.constant 7.812500e-03 : f32
    %4 = vector.broadcast %cst : f32 to vector<1x128xf32>
    %5 = arith.mulf %3, %4 : vector<1x128xf32>
    %6 = vector.extract_strided_slice %1 {offsets = [1, 0], sizes = [1, 128], strides = [1, 1]} : vector<8x128xf32> to vector<1x128xf32>
    %cst_5 = arith.constant 7.812500e-03 : f32
    %7 = vector.broadcast %cst_5 : f32 to vector<1x128xf32>
    %8 = arith.mulf %6, %7 : vector<1x128xf32>
    %9 = arith.mulf %5, %5 : vector<1x128xf32>
    %10 = arith.subf %8, %9 : vector<1x128xf32>
    %11 = vector.extract_strided_slice %2 {offsets = [0, 0], sizes = [1, 128], strides = [1, 1]} : vector<8x128xf32> to vector<1x128xf32>
    %cst_6 = arith.constant 9.99999974E-6 : f32
    %12 = vector.broadcast %cst_6 : f32 to vector<1x128xf32>
    %13 = arith.addf %10, %12 : vector<1x128xf32>
    %14 = math.rsqrt %13 : vector<1x128xf32>
    %15 = arith.mulf %11, %14 : vector<1x128xf32>
    %16 = vector.extract_strided_slice %2 {offsets = [1, 0], sizes = [1, 128], strides = [1, 1]} : vector<8x128xf32> to vector<1x128xf32>
    %17 = arith.mulf %5, %15 : vector<1x128xf32>
    %18 = arith.subf %16, %17 : vector<1x128xf32>
    %19 = arith.extf %0 : vector<128x128xbf16> to vector<128x128xf32>
    %20 = vector.broadcast %15 : vector<1x128xf32> to vector<128x128xf32>
    %21 = arith.mulf %19, %20 : vector<128x128xf32>
    %22 = vector.broadcast %18 : vector<1x128xf32> to vector<128x128xf32>
    %23 = arith.addf %21, %22 : vector<128x128xf32>
    %c0_7 = arith.constant 0 : index
    %c0_8 = arith.constant 0 : index
    %24 = vector.load %arg4[%c0_7, %c0_8] : memref<128x128xbf16, #tpu.memory_space<vmem>>, vector<128x128xbf16>
    %c0_9 = arith.constant 0 : index
    %c0_10 = arith.constant 0 : index
    %25 = vector.load %arg5[%c0_9, %c0_10] : memref<8x128xf32, #tpu.memory_space<vmem>>, vector<8x128xf32>
    %c0_11 = arith.constant 0 : index
    %c0_12 = arith.constant 0 : index
    %26 = vector.load %arg6[%c0_11, %c0_12] : memref<8x128xf32, #tpu.memory_space<vmem>>, vector<8x128xf32>
    %27 = vector.extract_strided_slice %25 {offsets = [0, 0], sizes = [1, 128], strides = [1, 1]} : vector<8x128xf32> to vector<1x128xf32>
    %cst_13 = arith.constant 7.812500e-03 : f32
    %28 = vector.broadcast %cst_13 : f32 to vector<1x128xf32>
    %29 = arith.mulf %27, %28 : vector<1x128xf32>
    %30 = vector.extract_strided_slice %25 {offsets = [1, 0], sizes = [1, 128], strides = [1, 1]} : vector<8x128xf32> to vector<1x128xf32>
    %cst_14 = arith.constant 7.812500e-03 : f32
    %31 = vector.broadcast %cst_14 : f32 to vector<1x128xf32>
    %32 = arith.mulf %30, %31 : vector<1x128xf32>
    %33 = arith.mulf %29, %29 : vector<1x128xf32>
    %34 = arith.subf %32, %33 : vector<1x128xf32>
    %35 = vector.extract_strided_slice %26 {offsets = [0, 0], sizes = [1, 128], strides = [1, 1]} : vector<8x128xf32> to vector<1x128xf32>
    %cst_15 = arith.constant 9.99999974E-6 : f32
    %36 = vector.broadcast %cst_15 : f32 to vector<1x128xf32>
    %37 = arith.addf %34, %36 : vector<1x128xf32>
    %38 = math.rsqrt %37 : vector<1x128xf32>
    %39 = arith.mulf %35, %38 : vector<1x128xf32>
    %40 = vector.extract_strided_slice %26 {offsets = [1, 0], sizes = [1, 128], strides = [1, 1]} : vector<8x128xf32> to vector<1x128xf32>
    %41 = arith.mulf %29, %39 : vector<1x128xf32>
    %42 = arith.subf %40, %41 : vector<1x128xf32>
    %43 = arith.extf %24 : vector<128x128xbf16> to vector<128x128xf32>
    %44 = vector.broadcast %39 : vector<1x128xf32> to vector<128x128xf32>
    %45 = arith.mulf %43, %44 : vector<128x128xf32>
    %46 = vector.broadcast %42 : vector<1x128xf32> to vector<128x128xf32>
    %47 = arith.addf %45, %46 : vector<128x128xf32>
    %48 = arith.addf %23, %47 : vector<128x128xf32>
    %cst_16 = arith.constant 0.000000e+00 : f32
    %49 = vector.broadcast %cst_16 : f32 to vector<128x128xf32>
    %50 = arith.maximumf %48, %49 : vector<128x128xf32>
    %c0_17 = arith.constant 0 : index
    %c0_18 = arith.constant 0 : index
    %51 = vector.load %arg7[%c0_17, %c0_18] : memref<128x128xf32, #tpu.memory_space<vmem>>, vector<128x128xf32>
    tpu.vector_store %arg7[%c0_17, %c0_18], %50 {strides = array<i32>} : memref<128x128xf32, #tpu.memory_space<vmem>>, vector<128x128xf32>,
    return
  }
  func.func @transform_0(%arg0: i32) -> (i32, i32) {
    %c0_i32 = arith.constant 0 : i32
    %c0_i32_0 = arith.constant 0 : i32
    return %arg0, %c0_i32 : i32, i32
  }
  func.func @transform_1(%arg0: i32) -> (i32, i32) {
    %c0_i32 = arith.constant 0 : i32
    %c0_i32_0 = arith.constant 0 : i32
    %c0_i32_1 = arith.constant 0 : i32
    return %c0_i32, %c0_i32_0 : i32, i32
  }
  func.func @transform_2(%arg0: i32) -> (i32, i32) {
    %c0_i32 = arith.constant 0 : i32
    %c0_i32_0 = arith.constant 0 : i32
    %c0_i32_1 = arith.constant 0 : i32
    return %c0_i32, %c0_i32_0 : i32, i32
  }
  func.func @transform_3(%arg0: i32) -> (i32, i32) {
    %c0_i32 = arith.constant 0 : i32
    %c0_i32_0 = arith.constant 0 : i32
    return %arg0, %c0_i32 : i32, i32
  }
  func.func @transform_4(%arg0: i32) -> (i32, i32) {
    %c0_i32 = arith.constant 0 : i32
    %c0_i32_0 = arith.constant 0 : i32
    %c0_i32_1 = arith.constant 0 : i32
    return %c0_i32, %c0_i32_0 : i32, i32
  }
  func.func @transform_5(%arg0: i32) -> (i32, i32) {
    %c0_i32 = arith.constant 0 : i32
    %c0_i32_0 = arith.constant 0 : i32
    %c0_i32_1 = arith.constant 0 : i32
    return %c0_i32, %c0_i32_0 : i32, i32
  }
  func.func @transform_6(%arg0: i32) -> (i32, i32) {
    %c0_i32 = arith.constant 0 : i32
    %c0_i32_0 = arith.constant 0 : i32
    return %arg0, %c0_i32 : i32, i32
  }
}

</mosaic_0001>

<bundles_post_ra>
// kernel: basic_block_forward.7
= control target key start
LH: loop header
LB: loop body
LE: loop exit
PB: predicated region body
PF: predicated region fallthrough
CT: control target
= control target key end

     0   :  { %vm383_vm0 = vcmask 1040384   ;;  %vm385_vm1 = vcmask 1041408   ;;  %s668_s1 = inlined_call_operand.vmem [shape: bf16[128,128], index: 1, kind: input, shape index: {}]   ;;  %s669_s0 = inlined_call_operand.vmem [shape: bf16[128,128], index: 0, kind: input, shape index: {}]   ;;  %s670_s2 = inlined_call_operand.vmem [shape: bf16[128,128], index: 2, kind: output, shape index: {0}]   ;;  %s671_s3 = inlined_call_operand.vmem [shape: f32[8,128], index: 3, kind: output, shape index: {1}]  }
   0x1   :  { %v557_v0 = vld [vmem:[%s668_s1] sm:$0xff]   ;;  %v558_v1 = vld [vmem:[%s668_s1 + $0x8] sm:$0xff]   ;;  %v559_v2 = vld [vmem:[%s668_s1 + $0x10] sm:$0xff]  }
   0x2   :  { %508 = vmatprep.subr.bf16.mxu0 %v557_v0  ;;  %540 = vmatprep.subr.bf16.mxu1 %v557_v0  ;;  %v560_v3 = vld [vmem:[%s668_s1 + $0x18] sm:$0xff]   ;;  %v565_v4 = vld [vmem:[%s669_s0] sm:$0xff]   ;;  %v562_v7 = vld [vmem:[%s668_s1 + $0x28] sm:$0xff]  }
   0x3   :  { %509 = vmatpush3.bf16.msra.mxu0 %v557_v0  ;;  %548 = vmatpush3.bf16.msra.mxu1 %v557_v0  ;;  %v561_v5 = vld [vmem:[%s668_s1 + $0x20] sm:$0xff]   ;;  %v563_v8 = vld [vmem:[%s668_s1 + $0x30] sm:$0xff]   ;;  %v564_v9 = vld [vmem:[%s668_s1 + $0x38] sm:$0xff]  }
   0x4   :  { %510 = vmatprep.subr.bf16.mxu0 %v558_v1  ;;  %541 = vmatprep.subr.bf16.mxu1 %v558_v1  ;;  %v569_v6 = vld [vmem:[%s669_s0 + $0x20] sm:$0xff]   ;;  %v566_v10 = vld [vmem:[%s669_s0 + $0x8] sm:$0xff]   ;;  %v567_v12 = vld [vmem:[%s669_s0 + $0x10] sm:$0xff]  }
   0x5   :  { %524 = vmatprep.mubr.bf16.mxu0 %v565_v4  ;;  %532 = vmatprep.mubr.bf16.mxu1 %v569_v6  ;;  %v570_v11 = vld [vmem:[%s669_s0 + $0x28] sm:$0xff]   ;;  %v571_v13 = vld [vmem:[%s669_s0 + $0x30] sm:$0xff]   ;;  %v568_v14 = vld [vmem:[%s669_s0 + $0x18] sm:$0xff]  }
   0x6   :  { %v572_v15 = vld [vmem:[%s669_s0 + $0x38] sm:$0xff]  }
   0x7   :  { %511 = vmatpush3.bf16.msra.mxu0 %v558_v1  ;;  %549 = vmatpush3.bf16.msra.mxu1 %v558_v1 }
   0x8   :  { %512 = vmatprep.subr.bf16.mxu0 %v559_v2  ;;  %542 = vmatprep.subr.bf16.mxu1 %v559_v2 }
   0xb   :  { %513 = vmatpush3.bf16.msra.mxu0 %v559_v2  ;;  %550 = vmatpush3.bf16.msra.mxu1 %v559_v2 }
   0xc   :  { %514 = vmatprep.subr.bf16.mxu0 %v560_v3  ;;  %543 = vmatprep.subr.bf16.mxu1 %v560_v3 }
   0xf   :  { %515 = vmatpush3.bf16.msra.mxu0 %v560_v3  ;;  %551 = vmatpush3.bf16.msra.mxu1 %v560_v3 }
  0x10   :  { %516 = vmatprep.subr.bf16.mxu0 %v561_v5  ;;  %544 = vmatprep.subr.bf16.mxu1 %v561_v5 }
  0x13   :  { %517 = vmatpush3.bf16.msra.mxu0 %v561_v5  ;;  %552 = vmatpush3.bf16.msra.mxu1 %v561_v5 }
  0x14   :  { %518 = vmatprep.subr.bf16.mxu0 %v562_v7  ;;  %545 = vmatprep.subr.bf16.mxu1 %v562_v7 }
  0x17   :  { %519 = vmatpush3.bf16.msra.mxu0 %v562_v7  ;;  %553 = vmatpush3.bf16.msra.mxu1 %v562_v7 }
  0x18   :  { %520 = vmatprep.subr.bf16.mxu0 %v563_v8  ;;  %546 = vmatprep.subr.bf16.mxu1 %v563_v8 }
  0x1b   :  { %521 = vmatpush3.bf16.msra.mxu0 %v563_v8  ;;  %554 = vmatpush3.bf16.msra.mxu1 %v563_v8 }
  0x1c   :  { %522 = vmatprep.subr.bf16.mxu0 %v564_v9  ;;  %547 = vmatprep.subr.bf16.mxu1 %v564_v9 }
  0x1f   :  { %523 = vmatpush3.bf16.msra.mxu0 %v564_v9  ;;  %555 = vmatpush3.bf16.msra.mxu1 %v564_v9 }
  0x22   :  { %525 = vmatmul.mubr.bf16.vlgmr.msra.gmra.mrb[0].mxu0 %v566_v10  ;;  %533 = vmatmul.mubr.bf16.vlgmr.msra.gmra.mrb[0].mxu1 %v570_v11 }
  0x23   :  { %528 = vmatprep.mubr.bf16.mxu0 %v567_v12  ;;  %536 = vmatprep.mubr.bf16.mxu1 %v571_v13 }
  0x2a   :  { %529 = vmatmul.mubr.bf16.gmra.mrb[4].mxu0 %v568_v14  ;;  %537 = vmatmul.mubr.bf16.gmra.mrb[4].mxu1 %v572_v15 }
  0xf5   :  { %v526_v16 = vpop.f32.mrb[0].mxu0  ;;  %v534_v17 = vpop.f32.mrb[0].mxu1 }
  0xf6   :  { %v176_v18 = vpop.f32.mrb[1].mxu0  ;;  %v208_v19 = vpop.f32.mrb[1].mxu1  ;;  %v347_v31 = vmul.f32 %v526_v16, %v526_v16  ;;  %v355_v3 = vmul.f32 %v534_v17, %v534_v17 }
  0xf7   :  { %v527_v20 = vpop.f32.mrb[2].mxu0  ;;  %v535_v21 = vpop.f32.mrb[2].mxu1  ;;  %v345_v22 = vmul.f32 %v176_v18, %v176_v18  ;;  %v353_v61 = vmul.f32 %v208_v19, %v208_v19 }
  0xf8   :  { %v453_v23 = vpack.c.bf16 %v527_v20, %v526_v16  ;;  %v179_v24 = vpop.f32.mrb[3].mxu0  ;;  %v473_v25 = vpack.c.bf16 %v535_v21, %v534_v17  ;;  %v211_v26 = vpop.f32.mrb[3].mxu1  ;;  %v348_v34 = vmul.f32 %v527_v20, %v527_v20  ;;  %v356_v6 = vmul.f32 %v535_v21, %v535_v21 }
  0xf9   :  { %v448_v27 = vpack.c.bf16 %v179_v24, %v176_v18  ;;  %v324_v28 = vadd.f32 %v179_v24, %v176_v18  ;;  %v346_v29 = vmul.f32 %v179_v24, %v179_v24  ;;  %v468_v30 = vpack.c.bf16 %v211_v26, %v208_v19 }
  0xfa   :  { %485 = vst [vmem:[%s670_s2 + $0x8] sm:$0xff] %v453_v23   ;;  %489 = vst [vmem:[%s670_s2 + $0x28] sm:$0xff] %v473_v25   ;;  %v354_v2 = vmul.f32 %v211_v26, %v211_v26 }
  0xfb   :  { %449 = vst [vmem:[%s670_s2] sm:$0xff] %v448_v27   ;;  %v325_v32 = vadd.f32 %v526_v16, %v324_v28  ;;  %v361_v33 = vadd.f32 %v346_v29, %v345_v22  ;;  %488 = vst [vmem:[%s670_s2 + $0x20] sm:$0xff] %v468_v30  }
  0xfd   :  { %v362_v35 = vadd.f32 %v361_v33, %v347_v31  ;;  %v530_v36 = vpop.f32.mrb[4].mxu0  ;;  %v326_v37 = vadd.f32 %v527_v20, %v325_v32  ;;  %v538_v38 = vpop.f32.mrb[4].mxu1 }
  0xfe   :  { %v192_v39 = vpop.f32.mrb[5].mxu0  ;;  %v224_v40 = vpop.f32.mrb[5].mxu1  ;;  %v351_v55 = vmul.f32 %v530_v36, %v530_v36  ;;  %v359_v15 = vmul.f32 %v538_v38, %v538_v38 }
  0xff   :  { %v327_v41 = vadd.f32 %v326_v37, %v192_v39  ;;  %v349_v42 = vmul.f32 %v192_v39, %v192_v39  ;;  %v363_v43 = vadd.f32 %v362_v35, %v348_v34  ;;  %v531_v44 = vpop.f32.mrb[6].mxu0  ;;  %v539_v45 = vpop.f32.mrb[6].mxu1  ;;  %v357_v9 = vmul.f32 %v224_v40, %v224_v40 }
 0x100   :  { %v463_v46 = vpack.c.bf16 %v531_v44, %v530_v36  ;;  %v195_v47 = vpop.f32.mrb[7].mxu0  ;;  %v483_v48 = vpack.c.bf16 %v539_v45, %v538_v38  ;;  %v227_v49 = vpop.f32.mrb[7].mxu1  ;;  %v352_v58 = vmul.f32 %v531_v44, %v531_v44 }
 0x101   :  { %v364_v50 = vadd.f32 %v363_v43, %v349_v42  ;;  %v458_v51 = vpack.c.bf16 %v195_v47, %v192_v39  ;;  %v328_v52 = vadd.f32 %v327_v41, %v195_v47  ;;  %v350_v53 = vmul.f32 %v195_v47, %v195_v47 }
 0x102   :  { %487 = vst [vmem:[%s670_s2 + $0x18] sm:$0xff] %v463_v46   ;;  %491 = vst [vmem:[%s670_s2 + $0x38] sm:$0xff] %v483_v48   ;;  %v478_v54 = vpack.c.bf16 %v227_v49, %v224_v40  ;;  %v358_v14 = vmul.f32 %v227_v49, %v227_v49 }
 0x103   :  { %486 = vst [vmem:[%s670_s2 + $0x10] sm:$0xff] %v458_v51   ;;  %v329_v56 = vadd.f32 %v530_v36, %v328_v52  ;;  %v365_v57 = vadd.f32 %v364_v50, %v350_v53 }
 0x104   :  { %490 = vst [vmem:[%s670_s2 + $0x30] sm:$0xff] %v478_v54  }
 0x105   :  { %v366_v59 = vadd.f32 %v365_v57, %v351_v55  ;;  %v330_v60 = vadd.f32 %v531_v44, %v329_v56 }
 0x107   :  { %v331_v62 = vadd.f32 %v330_v60, %v208_v19  ;;  %v367_v63 = vadd.f32 %v366_v59, %v352_v58  ;;  %v360_v19 = vmul.f32 %v539_v45, %v539_v45 }
 0x109   :  { %v368_v0 = vadd.f32 %v367_v63, %v353_v61  ;;  %v332_v1 = vadd.f32 %v331_v62, %v211_v26 }
 0x10b   :  { %v333_v4 = vadd.f32 %v534_v17, %v332_v1  ;;  %v369_v5 = vadd.f32 %v368_v0, %v354_v2 }
 0x10d   :  { %v370_v7 = vadd.f32 %v369_v5, %v355_v3  ;;  %v334_v8 = vadd.f32 %v535_v21, %v333_v4 }
 0x10f   :  { %v335_v10 = vadd.f32 %v334_v8, %v224_v40  ;;  %v371_v11 = vadd.f32 %v370_v7, %v356_v6 }
 0x111   :  { %v372_v12 = vadd.f32 %v371_v11, %v357_v9  ;;  %v336_v13 = vadd.f32 %v335_v10, %v227_v49 }
 0x113   :  { %v337_v16 = vadd.f32 %v538_v38, %v336_v13  ;;  %v373_v18 = vadd.f32 %v372_v12, %v358_v14 }
 0x115   :  { %v338_v20 = vadd.f32 %v539_v45, %v337_v16  ;;  %v374_v22 = vadd.f32 %v373_v18, %v359_v15 }
 0x117   :  { %v339_v23 = vrot.slane %v338_v20, 4  ;;  %v375_v24 = vadd.f32 %v374_v22, %v360_v19 }
 0x119   :  { %v340_v25 = vadd.f32 %v339_v23, %v338_v20  ;;  %v376_v17 = vrot.slane %v375_v24, 4 }
 0x11b   :  { %v341_v26 = vrot.slane %v340_v25, 2  ;;  %v377_v27 = vadd.f32 %v376_v17, %v375_v24 }
 0x11d   :  { %v342_v28 = vadd.f32 %v341_v26, %v340_v25  ;;  %v378_v21 = vrot.slane %v377_v27, 2 }
 0x11f   :  { %v343_v29 = vrot.slane %v342_v28, 1  ;;  %v379_v30 = vadd.f32 %v378_v21, %v377_v27 }
 0x121   :  { %v380_v31 = vrot.slane %v379_v30, 1  ;;  %v344_v32 = vadd.f32 %v343_v29, %v342_v28 }
 0x123   :  { %v381_v33 = vadd.f32 %v380_v31, %v379_v30 }
 0x125   :  { %v384_v34 = vsel %vm383_vm0, %v344_v32, %v381_v33 }
 0x126   :  { %v386_v35 = vsel %vm385_vm1, %v384_v34, 0.0 }
 0x127   :  { %388 = vst [vmem:[%s671_s3] sm:$0xff] %v386_v35 }

// kernel: basic_block_forward.6
= control target key start
LH: loop header
LB: loop body
LE: loop exit
PB: predicated region body
PF: predicated region fallthrough
CT: control target
= control target key end

     0   :  { %v65_v6 = vlaneseq  ;;  %s399_s1 = inlined_call_operand.vmem [shape: f32[8,128], index: 1, kind: input, shape index: {}]   ;;  %s400_s0 = inlined_call_operand.vmem [shape: bf16[128,128], index: 0, kind: input, shape index: {}]   ;;  %s401_s2 = inlined_call_operand.vmem [shape: f32[8,128], index: 2, kind: input, shape index: {}]   ;;  %s402_s3 = inlined_call_operand.vmem [shape: bf16[128,128], index: 3, kind: output, shape index: {}]  }
   0x1   :  { %v30_v0 = vld [vmem:[%s399_s1] sm:$0xff]  ;;  %v309_v13 = vld [vmem:[%s400_s0 + $0x8] sm:$0xff]   ;;  %v310_v14 = vld [vmem:[%s400_s0 + $0x10] sm:$0xff]  }
   0x2   :  { %v32_v1 = vmul.f32 0.0078125, %v30_v0  ;;  %v66_v7 = vshrl.u32 %v65_v6, 7  ;;  %v238_v9 = vld [vmem:[%s400_s0] sm:$0xff]   ;;  %v311_v15 = vld [vmem:[%s400_s0 + $0x18] sm:$0xff]   ;;  %v313_v20 = vld [vmem:[%s400_s0 + $0x28] sm:$0xff]   ;;  %v243_v21 = vunpack.c.l.bf16 %v309_v13  ;;  %v244_v22 = vunpack.c.h.bf16 %v309_v13 }
   0x3   :  { %v31_v10 = vld [vmem:[%s401_s2] sm:$0xff]  ;;  %v239_v16 = vunpack.c.l.bf16 %v238_v9  ;;  %v240_v17 = vunpack.c.h.bf16 %v238_v9  ;;  %v247_v23 = vunpack.c.l.bf16 %v310_v14  ;;  %v248_v24 = vunpack.c.h.bf16 %v310_v14  ;;  %v314_v25 = vld [vmem:[%s400_s0 + $0x30] sm:$0xff]   ;;  %v315_v30 = vld [vmem:[%s400_s0 + $0x38] sm:$0xff]  }
   0x4   :  { %v33_v2 = vmul.f32 %v32_v1, %v32_v1  ;;  %v67_v12 = vsub.s32 0, %v66_v7  ;;  %v312_v19 = vld [vmem:[%s400_s0 + $0x20] sm:$0xff]   ;;  %v87_v28 = vsub.s32 1, %v66_v7  ;;  %v251_v29 = vunpack.c.l.bf16 %v311_v15 }
   0x5   :  { %v252_v31 = vunpack.c.h.bf16 %v311_v15  ;;  %v255_v32 = vunpack.c.l.bf16 %v312_v19  ;;  %v256_v33 = vunpack.c.h.bf16 %v312_v19  ;;  %v259_v34 = vunpack.c.l.bf16 %v313_v20 }
   0x6   :  { %v35_v3 = vrot.slane %v33_v2, 7  ;;  %v260_v36 = vunpack.c.h.bf16 %v313_v20  ;;  %v263_v37 = vunpack.c.l.bf16 %v314_v25  ;;  %v264_v38 = vunpack.c.h.bf16 %v314_v25 }
   0x7   :  { %v267_v41 = vunpack.c.l.bf16 %v315_v30  ;;  %v268_v42 = vunpack.c.h.bf16 %v315_v30 }
   0x8   :  { %v37_v4 = vsub.f32 %v32_v1, %v35_v3 }
   0xa   :  { %v38_v5 = vadd.f32 1e-05, %v37_v4 }
   0xc   :  { %323 = vrsqrt.f32 %v38_v5 }
  0x16   :  { %v324_v8 = vpop.eup %323 }
  0x17   :  { %v41_v11 = vrot.slane %v324_v8, 1 }
  0x19   :  { %v43_v18 = vmul.f32 %v41_v11, %v31_v10 }
  0x1b   :  { %v44_v26 = vmul.f32 %v43_v18, %v32_v1  ;;  %v68_v27 = vrot.slane %v43_v18, %v67_v12 }
  0x1d   :  { %v46_v35 = vrot.slane %v44_v26, 7  ;;  %v69_v39 = vmul.f32 %v239_v16, %v68_v27  ;;  %v70_v40 = vmul.f32 %v240_v17, %v68_v27  ;;  %v71_v44 = vmul.f32 %v243_v21, %v68_v27 }
  0x1e   :  { %v72_v45 = vmul.f32 %v244_v22, %v68_v27  ;;  %v73_v46 = vmul.f32 %v247_v23, %v68_v27  ;;  %v74_v47 = vmul.f32 %v248_v24, %v68_v27  ;;  %v75_v48 = vmul.f32 %v251_v29, %v68_v27 }
  0x1f   :  { %v48_v43 = vsub.f32 %v31_v10, %v46_v35  ;;  %v76_v49 = vmul.f32 %v252_v31, %v68_v27  ;;  %v77_v50 = vmul.f32 %v255_v32, %v68_v27  ;;  %v78_v52 = vmul.f32 %v256_v33, %v68_v27 }
  0x20   :  { %v79_v53 = vmul.f32 %v259_v34, %v68_v27  ;;  %v80_v54 = vmul.f32 %v260_v36, %v68_v27  ;;  %v81_v55 = vmul.f32 %v263_v37, %v68_v27  ;;  %v82_v56 = vmul.f32 %v264_v38, %v68_v27 }
  0x21   :  { %v88_v51 = vrot.slane %v48_v43, %v87_v28  ;;  %v83_v57 = vmul.f32 %v267_v41, %v68_v27  ;;  %v84_v58 = vmul.f32 %v268_v42, %v68_v27 }
  0x23   :  { %v89_v59 = vadd.f32 %v88_v51, %v69_v39  ;;  %v90_v60 = vadd.f32 %v88_v51, %v70_v40  ;;  %v91_v61 = vadd.f32 %v88_v51, %v71_v44  ;;  %v92_v62 = vadd.f32 %v88_v51, %v72_v45 }
  0x24   :  { %v93_v63 = vadd.f32 %v88_v51, %v73_v46  ;;  %v94_v0 = vadd.f32 %v88_v51, %v74_v47  ;;  %v95_v1 = vadd.f32 %v88_v51, %v75_v48  ;;  %v96_v2 = vadd.f32 %v88_v51, %v76_v49 }
  0x25   :  { %v105_v3 = vmax.f32 %v89_v59, 0.0  ;;  %v106_v4 = vmax.f32 %v90_v60, 0.0  ;;  %v107_v5 = vmax.f32 %v91_v61, 0.0  ;;  %v108_v6 = vmax.f32 %v92_v62, 0.0 }
  0x26   :  { %v109_v7 = vmax.f32 %v93_v63, 0.0  ;;  %v110_v8 = vmax.f32 %v94_v0, 0.0  ;;  %v111_v9 = vmax.f32 %v95_v1, 0.0  ;;  %v112_v10 = vmax.f32 %v96_v2, 0.0 }
  0x27   :  { %v272_v11 = vpack.c.bf16 %v106_v4, %v105_v3  ;;  %v277_v12 = vpack.c.bf16 %v108_v6, %v107_v5  ;;  %v97_v13 = vadd.f32 %v88_v51, %v77_v50  ;;  %v98_v14 = vadd.f32 %v88_v51, %v78_v52 }
  0x28   :  { %v282_v15 = vpack.c.bf16 %v110_v8, %v109_v7  ;;  %v287_v16 = vpack.c.bf16 %v112_v10, %v111_v9  ;;  %v99_v17 = vadd.f32 %v88_v51, %v79_v53  ;;  %v100_v18 = vadd.f32 %v88_v51, %v80_v54 }
  0x29   :  { %273 = vst [vmem:[%s402_s3] sm:$0xff] %v272_v11   ;;  %316 = vst [vmem:[%s402_s3 + $0x8] sm:$0xff] %v277_v12   ;;  %v113_v19 = vmax.f32 %v97_v13, 0.0  ;;  %v114_v20 = vmax.f32 %v98_v14, 0.0  ;;  %v101_v21 = vadd.f32 %v88_v51, %v81_v55  ;;  %v102_v22 = vadd.f32 %v88_v51, %v82_v56 }
  0x2a   :  { %317 = vst [vmem:[%s402_s3 + $0x10] sm:$0xff] %v282_v15   ;;  %318 = vst [vmem:[%s402_s3 + $0x18] sm:$0xff] %v287_v16   ;;  %v115_v23 = vmax.f32 %v99_v17, 0.0  ;;  %v116_v24 = vmax.f32 %v100_v18, 0.0  ;;  %v103_v25 = vadd.f32 %v88_v51, %v83_v57  ;;  %v104_v26 = vadd.f32 %v88_v51, %v84_v58 }
  0x2b   :  { %v292_v27 = vpack.c.bf16 %v114_v20, %v113_v19  ;;  %v117_v28 = vmax.f32 %v101_v21, 0.0  ;;  %v118_v29 = vmax.f32 %v102_v22, 0.0 }
  0x2c   :  { %v297_v30 = vpack.c.bf16 %v116_v24, %v115_v23  ;;  %v119_v31 = vmax.f32 %v103_v25, 0.0  ;;  %v120_v32 = vmax.f32 %v104_v26, 0.0 }
  0x2d   :  { %319 = vst [vmem:[%s402_s3 + $0x20] sm:$0xff] %v292_v27   ;;  %v302_v33 = vpack.c.bf16 %v118_v29, %v117_v28 }
  0x2e   :  { %320 = vst [vmem:[%s402_s3 + $0x28] sm:$0xff] %v297_v30   ;;  %v307_v34 = vpack.c.bf16 %v120_v32, %v119_v31 }
  0x2f   :  { %321 = vst [vmem:[%s402_s3 + $0x30] sm:$0xff] %v302_v33  }
  0x30   :  { %322 = vst [vmem:[%s402_s3 + $0x38] sm:$0xff] %v307_v34  }

// kernel: basic_block_forward.9
= control target key start
LH: loop header
LB: loop body
LE: loop exit
PB: predicated region body
PF: predicated region fallthrough
CT: control target
= control target key end

     0   :  { %v74_v11 = vlaneseq  ;;  %s666_s1 = inlined_call_operand.vmem [shape: f32[8,128], index: 1, kind: input, shape index: {}]   ;;  %s667_s4 = inlined_call_operand.vmem [shape: f32[8,128], index: 4, kind: input, shape index: {}]   ;;  %s668_s0 = inlined_call_operand.vmem [shape: bf16[128,128], index: 0, kind: input, shape index: {}]   ;;  %s669_s3 = inlined_call_operand.vmem [shape: bf16[128,128], index: 3, kind: input, shape index: {}]   ;;  %s670_s2 = inlined_call_operand.vmem [shape: f32[8,128], index: 2, kind: input, shape index: {}]   ;;  %s671_s5 = inlined_call_operand.vmem [shape: f32[8,128], index: 5, kind: input, shape index: {}]   ;;  %s672_s6 = inlined_call_operand.vmem [shape: f32[128,128], index: 6, kind: output, shape index: {}]  }
   0x1   :  { %v39_v0 = vld [vmem:[%s666_s1] sm:$0xff]  ;;  %v405_v16 = vld [vmem:[%s668_s0 + $0x8] sm:$0xff]   ;;  %v417_v20 = vld [vmem:[%s668_s0 + $0x10] sm:$0xff]  }
   0x2   :  { %v377_v1 = vmul.f32 0.0078125, %v39_v0  ;;  %v130_v2 = vld [vmem:[%s667_s4] sm:$0xff]  ;;  %v395_v14 = vshrl.u32 %v74_v11, 7  ;;  %v410_v17 = vld [vmem:[%s669_s3 + $0x8] sm:$0xff]   ;;  %v422_v21 = vld [vmem:[%s669_s3 + $0x10] sm:$0xff]   ;;  %v263_v28 = vunpack.c.l.bf16 %v405_v16  ;;  %v264_v30 = vunpack.c.h.bf16 %v405_v16 }
   0x3   :  { %v382_v3 = vmul.f32 0.0078125, %v130_v2  ;;  %v393_v13 = vld [vmem:[%s668_s0] sm:$0xff]   ;;  %v431_v26 = vld [vmem:[%s668_s0 + $0x18] sm:$0xff]   ;;  %v295_v29 = vunpack.c.l.bf16 %v410_v17  ;;  %v296_v31 = vunpack.c.h.bf16 %v410_v17  ;;  %v267_v34 = vunpack.c.l.bf16 %v417_v20  ;;  %v459_v38 = vld [vmem:[%s668_s0 + $0x28] sm:$0xff]  }
   0x4   :  { %v42_v4 = vmul.f32 %v377_v1, %v377_v1  ;;  %v400_v15 = vld [vmem:[%s669_s3] sm:$0xff]   ;;  %v259_v18 = vunpack.c.l.bf16 %v393_v13  ;;  %v260_v19 = vunpack.c.h.bf16 %v393_v13  ;;  %v76_v22 = vsub.s32 0, %v395_v14  ;;  %v436_v27 = vld [vmem:[%s669_s3 + $0x18] sm:$0xff]   ;;  %v464_v39 = vld [vmem:[%s669_s3 + $0x28] sm:$0xff]  }
   0x5   :  { %v133_v5 = vmul.f32 %v382_v3, %v382_v3  ;;  %v96_v23 = vsub.s32 1, %v395_v14  ;;  %v291_v24 = vunpack.c.l.bf16 %v400_v15  ;;  %v292_v25 = vunpack.c.h.bf16 %v400_v15  ;;  %v445_v32 = vld [vmem:[%s668_s0 + $0x20] sm:$0xff]   ;;  %v476_v46 = vld [vmem:[%s668_s0 + $0x30] sm:$0xff]   ;;  %v495_v58 = vld [vmem:[%s668_s0 + $0x38] sm:$0xff]  }
   0x6   :  { %v44_v6 = vrot.slane %v42_v4, 7  ;;  %v450_v33 = vld [vmem:[%s669_s3 + $0x20] sm:$0xff]   ;;  %v299_v35 = vunpack.c.l.bf16 %v422_v21  ;;  %v268_v36 = vunpack.c.h.bf16 %v417_v20  ;;  %v300_v37 = vunpack.c.h.bf16 %v422_v21  ;;  %v487_v53 = vld [vmem:[%s669_s3 + $0x30] sm:$0xff]   ;;  %v500_v59 = vld [vmem:[%s669_s3 + $0x38] sm:$0xff]  }
   0x7   :  { %v135_v7 = vrot.slane %v133_v5, 7  ;;  %v40_v41 = vld [vmem:[%s670_s2] sm:$0xff]  ;;  %v271_v42 = vunpack.c.l.bf16 %v431_v26  ;;  %v303_v43 = vunpack.c.l.bf16 %v436_v27  ;;  %v272_v44 = vunpack.c.h.bf16 %v431_v26 }
   0x8   :  { %v46_v8 = vsub.f32 %v377_v1, %v44_v6  ;;  %v304_v45 = vunpack.c.h.bf16 %v436_v27  ;;  %v131_v49 = vld [vmem:[%s671_s5] sm:$0xff]  ;;  %v275_v50 = vunpack.c.l.bf16 %v445_v32  ;;  %v307_v51 = vunpack.c.l.bf16 %v450_v33 }
   0x9   :  { %v137_v9 = vsub.f32 %v382_v3, %v135_v7  ;;  %v276_v52 = vunpack.c.h.bf16 %v445_v32  ;;  %v308_v55 = vunpack.c.h.bf16 %v450_v33  ;;  %v279_v56 = vunpack.c.l.bf16 %v459_v38 }
   0xa   :  { %v47_v10 = vadd.f32 1e-05, %v46_v8  ;;  %v311_v57 = vunpack.c.l.bf16 %v464_v39  ;;  %v280_v61 = vunpack.c.h.bf16 %v459_v38  ;;  %v312_v62 = vunpack.c.h.bf16 %v464_v39 }
   0xb   :  { %v138_v12 = vadd.f32 1e-05, %v137_v9  ;;  %v283_v63 = vunpack.c.l.bf16 %v476_v46  ;;  %v315_v2 = vunpack.c.l.bf16 %v487_v53  ;;  %v284_v4 = vunpack.c.h.bf16 %v476_v46 }
   0xc   :  { %335 = vrsqrt.f32 %v47_v10  ;;  %v316_v5 = vunpack.c.h.bf16 %v487_v53  ;;  %v287_v8 = vunpack.c.l.bf16 %v495_v58  ;;  %v319_v9 = vunpack.c.l.bf16 %v500_v59 }
   0xd   :  { %337 = vrsqrt.f32 %v138_v12  ;;  %v288_v12 = vunpack.c.h.bf16 %v495_v58  ;;  %v320_v13 = vunpack.c.h.bf16 %v500_v59 }
  0x16   :  { %v336_v40 = vpop.eup %335 }
  0x17   :  { %v338_v47 = vpop.eup %337  ;;  %v50_v48 = vrot.slane %v336_v40, 1 }
  0x18   :  { %v141_v54 = vrot.slane %v338_v47, 1 }
  0x19   :  { %v52_v60 = vmul.f32 %v50_v48, %v40_v41 }
  0x1a   :  { %v143_v0 = vmul.f32 %v141_v54, %v131_v49 }
  0x1b   :  { %v53_v6 = vmul.f32 %v52_v60, %v377_v1  ;;  %v509_v7 = vrot.slane %v52_v60, %v76_v22 }
  0x1c   :  { %v144_v10 = vmul.f32 %v143_v0, %v382_v3  ;;  %v514_v11 = vrot.slane %v143_v0, %v76_v22 }
  0x1d   :  { %v55_v15 = vrot.slane %v53_v6, 7  ;;  %v78_v16 = vmul.f32 %v259_v18, %v509_v7  ;;  %v79_v17 = vmul.f32 %v260_v19, %v509_v7  ;;  %v80_v1 = vmul.f32 %v263_v28, %v509_v7 }
  0x1e   :  { %v146_v20 = vrot.slane %v144_v10, 7  ;;  %v169_v21 = vmul.f32 %v291_v24, %v514_v11  ;;  %v170_v26 = vmul.f32 %v292_v25, %v514_v11  ;;  %v171_v3 = vmul.f32 %v295_v29, %v514_v11 }
  0x1f   :  { %v57_v22 = vsub.f32 %v40_v41, %v55_v15  ;;  %v81_v27 = vmul.f32 %v264_v30, %v509_v7  ;;  %v172_v40 = vmul.f32 %v296_v31, %v514_v11  ;;  %v82_v47 = vmul.f32 %v267_v34, %v509_v7 }
  0x20   :  { %v148_v48 = vsub.f32 %v131_v49, %v146_v20  ;;  %v173_v18 = vmul.f32 %v299_v35, %v514_v11  ;;  %v83_v19 = vmul.f32 %v268_v36, %v509_v7  ;;  %v174_v28 = vmul.f32 %v300_v37, %v514_v11 }
  0x21   :  { %v532_v24 = vrot.slane %v57_v22, %v96_v23  ;;  %v84_v25 = vmul.f32 %v271_v42, %v509_v7  ;;  %v175_v29 = vmul.f32 %v303_v43, %v514_v11  ;;  %v85_v30 = vmul.f32 %v272_v44, %v509_v7 }
  0x22   :  { %v539_v31 = vrot.slane %v148_v48, %v96_v23  ;;  %v176_v34 = vmul.f32 %v304_v45, %v514_v11  ;;  %v86_v35 = vmul.f32 %v275_v50, %v509_v7  ;;  %v177_v36 = vmul.f32 %v307_v51, %v514_v11 }
  0x23   :  { %v98_v37 = vadd.f32 %v532_v24, %v78_v16  ;;  %v99_v41 = vadd.f32 %v532_v24, %v79_v17  ;;  %v100_v42 = vadd.f32 %v532_v24, %v80_v1  ;;  %v101_v43 = vadd.f32 %v532_v24, %v81_v27 }
  0x24   :  { %v189_v44 = vadd.f32 %v539_v31, %v169_v21  ;;  %v190_v14 = vadd.f32 %v539_v31, %v170_v26  ;;  %v191_v23 = vadd.f32 %v539_v31, %v171_v3  ;;  %v192_v45 = vadd.f32 %v539_v31, %v172_v40 }
  0x25   :  { %v102_v49 = vadd.f32 %v532_v24, %v82_v47  ;;  %v193_v50 = vadd.f32 %v539_v31, %v173_v18  ;;  %v103_v51 = vadd.f32 %v532_v24, %v83_v19  ;;  %v194_v54 = vadd.f32 %v539_v31, %v174_v28 }
  0x26   :  { %v205_v60 = vadd.f32 %v189_v44, %v98_v37  ;;  %v206_v0 = vadd.f32 %v190_v14, %v99_v41  ;;  %v207_v6 = vadd.f32 %v191_v23, %v100_v42  ;;  %v208_v10 = vadd.f32 %v192_v45, %v101_v43 }
  0x27   :  { %v209_v15 = vadd.f32 %v193_v50, %v102_v49  ;;  %v210_v16 = vadd.f32 %v194_v54, %v103_v51  ;;  %v104_v17 = vadd.f32 %v532_v24, %v84_v25  ;;  %v195_v1 = vadd.f32 %v539_v31, %v175_v29 }
  0x28   :  { %v221_v20 = vmax.f32 %v205_v60, 0.0  ;;  %v222_v21 = vmax.f32 %v206_v0, 0.0  ;;  %v223_v26 = vmax.f32 %v207_v6, 0.0  ;;  %v224_v3 = vmax.f32 %v208_v10, 0.0 }
  0x29   :  { %v225_v22 = vmax.f32 %v209_v15, 0.0  ;;  %v226_v27 = vmax.f32 %v210_v16, 0.0  ;;  %v211_v40 = vadd.f32 %v195_v1, %v104_v17  ;;  %v105_v47 = vadd.f32 %v532_v24, %v85_v30 }
  0x2a   :  { %237 = vst [vmem:[%s672_s6] sm:$0xff] %v221_v20  ;;  %238 = vst [vmem:[%s672_s6 + $0x8] sm:$0xff] %v222_v21  ;;  %v196_v48 = vadd.f32 %v539_v31, %v176_v34  ;;  %v106_v18 = vadd.f32 %v532_v24, %v86_v35  ;;  %v197_v19 = vadd.f32 %v539_v31, %v177_v36 }
  0x2b   :  { %239 = vst [vmem:[%s672_s6 + $0x10] sm:$0xff] %v223_v26  ;;  %240 = vst [vmem:[%s672_s6 + $0x18] sm:$0xff] %v224_v3  ;;  %v87_v28 = vmul.f32 %v276_v52, %v509_v7  ;;  %v227_v25 = vmax.f32 %v211_v40, 0.0  ;;  %v178_v29 = vmul.f32 %v308_v55, %v514_v11  ;;  %v88_v30 = vmul.f32 %v279_v56, %v509_v7 }
  0x2c   :  { %241 = vst [vmem:[%s672_s6 + $0x20] sm:$0xff] %v225_v22  ;;  %242 = vst [vmem:[%s672_s6 + $0x28] sm:$0xff] %v226_v27  ;;  %v179_v32 = vmul.f32 %v311_v57, %v514_v11  ;;  %v212_v52 = vadd.f32 %v196_v48, %v105_v47  ;;  %v213_v34 = vadd.f32 %v197_v19, %v106_v18 }
  0x2d   :  { %v107_v35 = vadd.f32 %v532_v24, %v87_v28  ;;  %v89_v36 = vmul.f32 %v280_v61, %v509_v7  ;;  %243 = vst [vmem:[%s672_s6 + $0x30] sm:$0xff] %v227_v25  ;;  %v198_v33 = vadd.f32 %v539_v31, %v178_v29  ;;  %v108_v55 = vadd.f32 %v532_v24, %v88_v30 }
  0x2e   :  { %v199_v56 = vadd.f32 %v539_v31, %v179_v32  ;;  %v180_v57 = vmul.f32 %v312_v62, %v514_v11  ;;  %v228_v37 = vmax.f32 %v212_v52, 0.0  ;;  %v229_v41 = vmax.f32 %v213_v34, 0.0 }
  0x2f   :  { %v109_v42 = vadd.f32 %v532_v24, %v89_v36  ;;  %v90_v38 = vmul.f32 %v283_v63, %v509_v7  ;;  %v214_v61 = vadd.f32 %v198_v33, %v107_v35  ;;  %v181_v14 = vmul.f32 %v315_v2, %v514_v11 }
  0x30   :  { %v215_v43 = vadd.f32 %v199_v56, %v108_v55  ;;  %v200_v44 = vadd.f32 %v539_v31, %v180_v57  ;;  %244 = vst [vmem:[%s672_s6 + $0x38] sm:$0xff] %v228_v37  ;;  %245 = vst [vmem:[%s672_s6 + $0x40] sm:$0xff] %v229_v41  ;;  %v91_v62 = vmul.f32 %v284_v4, %v509_v7 }
  0x31   :  { %v110_v39 = vadd.f32 %v532_v24, %v90_v38  ;;  %v182_v63 = vmul.f32 %v316_v5, %v514_v11  ;;  %v92_v2 = vmul.f32 %v287_v8, %v509_v7  ;;  %v230_v23 = vmax.f32 %v214_v61, 0.0 }
  0x32   :  { %v231_v45 = vmax.f32 %v215_v43, 0.0  ;;  %v216_v49 = vadd.f32 %v200_v44, %v109_v42  ;;  %v201_v50 = vadd.f32 %v539_v31, %v181_v14  ;;  %v111_v51 = vadd.f32 %v532_v24, %v91_v62 }
  0x33   :  { %v202_v54 = vadd.f32 %v539_v31, %v182_v63  ;;  %v112_v46 = vadd.f32 %v532_v24, %v92_v2  ;;  %v183_v53 = vmul.f32 %v319_v9, %v514_v11  ;;  %246 = vst [vmem:[%s672_s6 + $0x48] sm:$0xff] %v230_v23  ;;  %v93_v8 = vmul.f32 %v288_v12, %v509_v7 }
  0x34   :  { %247 = vst [vmem:[%s672_s6 + $0x50] sm:$0xff] %v231_v45  ;;  %v232_v4 = vmax.f32 %v216_v49, 0.0  ;;  %v217_v5 = vadd.f32 %v201_v50, %v110_v39  ;;  %v184_v60 = vmul.f32 %v320_v13, %v514_v11 }
  0x35   :  { %v218_v0 = vadd.f32 %v202_v54, %v111_v51  ;;  %v203_v9 = vadd.f32 %v539_v31, %v183_v53  ;;  %v113_v10 = vadd.f32 %v532_v24, %v93_v8 }
  0x36   :  { %248 = vst [vmem:[%s672_s6 + $0x58] sm:$0xff] %v232_v4  ;;  %v233_v6 = vmax.f32 %v217_v5, 0.0  ;;  %v204_v15 = vadd.f32 %v539_v31, %v184_v60 }
  0x37   :  { %v234_v16 = vmax.f32 %v218_v0, 0.0  ;;  %v219_v17 = vadd.f32 %v203_v9, %v112_v46 }
  0x38   :  { %249 = vst [vmem:[%s672_s6 + $0x60] sm:$0xff] %v233_v6  ;;  %v220_v58 = vadd.f32 %v204_v15, %v113_v10 }
  0x39   :  { %250 = vst [vmem:[%s672_s6 + $0x68] sm:$0xff] %v234_v16  ;;  %v235_v59 = vmax.f32 %v219_v17, 0.0 }
  0x3a   :  { %v236_v7 = vmax.f32 %v220_v58, 0.0 }
  0x3b   :  { %251 = vst [vmem:[%s672_s6 + $0x70] sm:$0xff] %v235_v59 }
  0x3c   :  { %252 = vst [vmem:[%s672_s6 + $0x78] sm:$0xff] %v236_v7 }

</bundles_post_ra>
